<compile_context>
chip_gen: v7x
topology: tpu7x:2x2x1
jax: 0.10.0
libtpu: 0.0.40
codegen_flags: <defaults>
</compile_context>

<pallas_src>
import jax
import jax.numpy as jnp
from jax.experimental import pallas as pl
from jax.experimental.pallas import tpu as pltpu

D_IN, H1, H2, D_OUT = 784, 128, 64, 2


def _round_up(n, m):
    return ((n + m - 1) // m) * m


def _siamese_kernel(x1_ref, x2_ref, w1_ref, b1_ref, w2_ref, b2_ref, w3_ref, b3_ref,
                    o1_ref, o2_ref):
    """Both towers through the shared (VMEM-resident) weights, one batch tile each."""

    def tower(x_ref, o_ref):
        # fc1 + relu (bf16 operands, f32 accumulation on the MXU)
        h = jnp.dot(x_ref[...].astype(jnp.bfloat16), w1_ref[...],
                    preferred_element_type=jnp.float32)
        h = jnp.maximum(h + b1_ref[...], 0.0)
        # (dropout: identity in eval mode)
        # fc2 + relu
        h = jnp.dot(h.astype(jnp.bfloat16), w2_ref[...],
                    preferred_element_type=jnp.float32)
        h = jnp.maximum(h + b2_ref[...], 0.0)
        # (dropout: identity in eval mode)
        # fc3 (no activation), stored directly as (tb, 2) f32
        out = jnp.dot(h.astype(jnp.bfloat16), w3_ref[...],
                      preferred_element_type=jnp.float32) + b3_ref[...]
        o_ref[...] = out.astype(o_ref.dtype)

    tower(x1_ref, o1_ref)
    tower(x2_ref, o2_ref)


def _prepare_params(params):
    """Cast weights to bf16 (tiny, one pass over ~435 KB); keep biases f32."""
    w1, b1, w2, b2, w3, b3 = params
    return (w1.astype(jnp.bfloat16), b1.astype(jnp.float32),
            w2.astype(jnp.bfloat16), b2.astype(jnp.float32),
            w3.astype(jnp.bfloat16), b3.astype(jnp.float32))


def _choose_tile(n, block_b):
    """Batch tile (rows per tower per grid step)."""
    if n <= 16:
        # Single block whose dims equal the full array dims (always legal, no padding).
        return n
    # >= 2 grid steps whenever possible so v7x's two TensorCores both get work;
    # 16-row granularity keeps packed-sublane tiles whole.
    return max(16, min(block_b, _round_up(pl.cdiv(n, 2), 16)))


def _siamese_pallas(x1, x2, kparams, block_b=512):
    """Fused two-tower forward over (N, 784) inputs in one pallas_call."""
    w1, b1, w2, b2, w3, b3 = kparams
    n = x1.shape[0]
    tb = _choose_tile(n, block_b)
    n_tiles = pl.cdiv(n, tb)

    # Weights/biases: constant index_map -> fetched once, VMEM-resident across the grid.
    resident = lambda shape: pl.BlockSpec(shape, lambda i: tuple(0 for _ in shape))

    o1, o2 = pl.pallas_call(
        _siamese_kernel,
        out_shape=(jax.ShapeDtypeStruct((n, D_OUT), jnp.float32),
                   jax.ShapeDtypeStruct((n, D_OUT), jnp.float32)),
        grid_spec=pltpu.PrefetchScalarGridSpec(
            num_scalar_prefetch=0,
            grid=(n_tiles,),
            in_specs=[
                pl.BlockSpec((tb, D_IN), lambda i: (i, 0)),   # x1: tiled over batch
                pl.BlockSpec((tb, D_IN), lambda i: (i, 0)),   # x2: tiled over batch
                resident((D_IN, H1)),                         # w1
                resident((1, H1)),                            # b1
                resident((H1, H2)),                           # w2
                resident((1, H2)),                            # b2
                resident((H2, D_OUT)),                        # w3 (unpadded: 64x2)
                resident((1, D_OUT)),                         # b3 (unpadded: 1x2)
            ],
            out_specs=[
                pl.BlockSpec((tb, D_OUT), lambda i: (i, 0)),  # output1
                pl.BlockSpec((tb, D_OUT), lambda i: (i, 0)),  # output2
            ],
        ),
        compiler_params=pltpu.CompilerParams(
            dimension_semantics=("parallel",)),
    )(x1, x2, w1, b1, w2, b2, w3, b3)
    return o1, o2


def siamese_forward(input1, input2, params, block_b=512):
    """Mirrors SiameseNetwork.forward: returns (output1, output2), shared weights."""
    x1 = input1.reshape(-1, D_IN)
    x2 = input2.reshape(-1, D_IN)
    n1, n2 = x1.shape[0], x2.shape[0]
    n = max(n1, n2)
    # Siamese inputs are normally paired (n1 == n2); pad the rare unequal case only.
    if n1 < n:
        x1 = jnp.pad(x1, ((0, n - n1), (0, 0)))
    if n2 < n:
        x2 = jnp.pad(x2, ((0, n - n2), (0, 0)))
    kparams = _prepare_params(params)
    o1, o2 = _siamese_pallas(x1, x2, kparams, block_b)
    return o1[:n1], o2[:n2]


def init_params(key):
    k1, k2, k3, k4, k5, k6 = jax.random.split(key, 6)
    # Deterministic, Kaiming-ish scaling; biases kept 2D (1, N) for TPU-friendly layout.
    w1 = jax.random.normal(k1, (D_IN, H1), jnp.float32) * (1.0 / D_IN) ** 0.5
    b1 = jax.random.normal(k2, (1, H1), jnp.float32) * 0.01
    w2 = jax.random.normal(k3, (H1, H2), jnp.float32) * (1.0 / H1) ** 0.5
    b2 = jax.random.normal(k4, (1, H2), jnp.float32) * 0.01
    w3 = jax.random.normal(k5, (H2, D_OUT), jnp.float32) * (1.0 / H2) ** 0.5
    b3 = jax.random.normal(k6, (1, D_OUT), jnp.float32) * 0.01
    return (w1, b1, w2, b2, w3, b3)


if __name__ == "__main__":
    key = jax.random.PRNGKey(0)
    kp, ka, kb = jax.random.split(key, 3)
    params = init_params(kp)

    # Two MNIST-like NCHW inputs.
    input1 = jax.random.normal(ka, (2, 1, 28, 28), jnp.float32)
    input2 = jax.random.normal(kb, (2, 1, 28, 28), jnp.float32)

    fwd = jax.jit(lambda a, b: siamese_forward(a, b, params))
    out1, out2 = fwd(input1, input2)
    jax.block_until_ready((out1, out2))

    # Reference in plain JAX with matching bf16-operand / f32-accumulate math
    # (eval-mode dropout == identity).
    def ref_once(x):
        w1, b1, w2, b2, w3, b3 = params
        h = x.reshape(-1, D_IN).astype(jnp.bfloat16)
        h = jnp.maximum(
            jnp.dot(h, w1.astype(jnp.bfloat16),
                    preferred_element_type=jnp.float32) + b1, 0.0)
        h = jnp.maximum(
            jnp.dot(h.astype(jnp.bfloat16), w2.astype(jnp.bfloat16),
                    preferred_element_type=jnp.float32) + b2, 0.0)
        return jnp.dot(h.astype(jnp.bfloat16), w3.astype(jnp.bfloat16),
                       preferred_element_type=jnp.float32) + b3

    r1, r2 = ref_once(input1), ref_once(input2)
    assert out1.shape == (2, 2) and out2.shape == (2, 2)
    assert jnp.allclose(out1, r1, atol=2e-2, rtol=2e-2)
    assert jnp.allclose(out2, r2, atol=2e-2, rtol=2e-2)

    print("KERNEL_OK")
</pallas_src>

<mosaic_0001>
module attributes {stable_mosaic.version = 11 : i64} {
  func.func @_siamese_kernel(%arg0: i32, %arg1: memref<2x784xf32, #tpu.memory_space<vmem>>, %arg2: memref<2x784xf32, #tpu.memory_space<vmem>>, %arg3: memref<784x128xbf16, #tpu.memory_space<vmem>>, %arg4: memref<1x128xf32, #tpu.memory_space<vmem>>, %arg5: memref<128x64xbf16, #tpu.memory_space<vmem>>, %arg6: memref<1x64xf32, #tpu.memory_space<vmem>>, %arg7: memref<64x2xbf16, #tpu.memory_space<vmem>>, %arg8: memref<1x2xf32, #tpu.memory_space<vmem>>, %arg9: memref<2x2xf32, #tpu.memory_space<vmem>>, %arg10: memref<2x2xf32, #tpu.memory_space<vmem>>) attributes {dimension_semantics = [#tpu.dimension_semantics<parallel>], iteration_bounds = array<i64: 1>, scalar_prefetch = 0 : i64, scratch_operands = 0 : i64, tpu.core_type = #tpu.core_type<tc>, window_params = [{transform_indices = @transform_0, window_bounds = array<i64: 2, 784>}, {transform_indices = @transform_1, window_bounds = array<i64: 2, 784>}, {pipeline_mode = #tpu.pipeline_mode<synchronous>, transform_indices = @transform_2, window_bounds = array<i64: 784, 128>}, {pipeline_mode = #tpu.pipeline_mode<synchronous>, transform_indices = @transform_3, window_bounds = array<i64: 1, 128>}, {pipeline_mode = #tpu.pipeline_mode<synchronous>, transform_indices = @transform_4, window_bounds = array<i64: 128, 64>}, {pipeline_mode = #tpu.pipeline_mode<synchronous>, transform_indices = @transform_5, window_bounds = array<i64: 1, 64>}, {pipeline_mode = #tpu.pipeline_mode<synchronous>, transform_indices = @transform_6, window_bounds = array<i64: 64, 2>}, {pipeline_mode = #tpu.pipeline_mode<synchronous>, transform_indices = @transform_7, window_bounds = array<i64: 1, 2>}, {transform_indices = @transform_8, window_bounds = array<i64: 2, 2>}, {transform_indices = @transform_9, window_bounds = array<i64: 2, 2>}]} {
    %c0 = arith.constant 0 : index
    %c0_0 = arith.constant 0 : index
    %0 = vector.load %arg1[%c0, %c0_0] : memref<2x784xf32, #tpu.memory_space<vmem>>, vector<2x784xf32>
    %1 = arith.truncf %0 : vector<2x784xf32> to vector<2x784xbf16>
    %c0_1 = arith.constant 0 : index
    %c0_2 = arith.constant 0 : index
    %2 = vector.load %arg3[%c0_1, %c0_2] : memref<784x128xbf16, #tpu.memory_space<vmem>>, vector<784x128xbf16>
    %cst = arith.constant dense<0.000000e+00> : vector<2x128xf32>
    %3 = tpu.matmul %1, %2, %cst {dimension_numbers = #tpu.dot_dimension_numbers<[1], [0], [0], [1], [0, 0, 1, 1], [], []>} : vector<2x784xbf16>, vector<784x128xbf16>, vector<2x128xf32> -> vector<2x128xf32>
    %c0_3 = arith.constant 0 : index
    %c0_4 = arith.constant 0 : index
    %4 = vector.load %arg4[%c0_3, %c0_4] : memref<1x128xf32, #tpu.memory_space<vmem>>, vector<1x128xf32>
    %5 = vector.broadcast %4 : vector<1x128xf32> to vector<2x128xf32>
    %6 = arith.addf %3, %5 : vector<2x128xf32>
    %cst_5 = arith.constant 0.000000e+00 : f32
    %7 = vector.broadcast %cst_5 : f32 to vector<2x128xf32>
    %8 = arith.maximumf %6, %7 : vector<2x128xf32>
    %9 = arith.truncf %8 : vector<2x128xf32> to vector<2x128xbf16>
    %c0_6 = arith.constant 0 : index
    %c0_7 = arith.constant 0 : index
    %10 = vector.load %arg5[%c0_6, %c0_7] : memref<128x64xbf16, #tpu.memory_space<vmem>>, vector<128x64xbf16>
    %cst_8 = arith.constant dense<0.000000e+00> : vector<2x64xf32>
    %11 = tpu.matmul %9, %10, %cst_8 {dimension_numbers = #tpu.dot_dimension_numbers<[1], [0], [0], [1], [0, 0, 1, 1], [], []>} : vector<2x128xbf16>, vector<128x64xbf16>, vector<2x64xf32> -> vector<2x64xf32>
    %c0_9 = arith.constant 0 : index
    %c0_10 = arith.constant 0 : index
    %12 = vector.load %arg6[%c0_9, %c0_10] : memref<1x64xf32, #tpu.memory_space<vmem>>, vector<1x64xf32>
    %13 = vector.broadcast %12 : vector<1x64xf32> to vector<2x64xf32>
    %14 = arith.addf %11, %13 : vector<2x64xf32>
    %cst_11 = arith.constant 0.000000e+00 : f32
    %15 = vector.broadcast %cst_11 : f32 to vector<2x64xf32>
    %16 = arith.maximumf %14, %15 : vector<2x64xf32>
    %17 = arith.truncf %16 : vector<2x64xf32> to vector<2x64xbf16>
    %c0_12 = arith.constant 0 : index
    %c0_13 = arith.constant 0 : index
    %18 = vector.load %arg7[%c0_12, %c0_13] : memref<64x2xbf16, #tpu.memory_space<vmem>>, vector<64x2xbf16>
    %cst_14 = arith.constant dense<0.000000e+00> : vector<2x2xf32>
    %19 = tpu.matmul %17, %18, %cst_14 {dimension_numbers = #tpu.dot_dimension_numbers<[1], [0], [0], [1], [0, 0, 1, 1], [], []>} : vector<2x64xbf16>, vector<64x2xbf16>, vector<2x2xf32> -> vector<2x2xf32>
    %c0_15 = arith.constant 0 : index
    %c0_16 = arith.constant 0 : index
    %20 = vector.load %arg8[%c0_15, %c0_16] : memref<1x2xf32, #tpu.memory_space<vmem>>, vector<1x2xf32>
    %21 = vector.broadcast %20 : vector<1x2xf32> to vector<2x2xf32>
    %22 = arith.addf %19, %21 : vector<2x2xf32>
    %c0_17 = arith.constant 0 : index
    %c0_18 = arith.constant 0 : index
    %23 = vector.load %arg9[%c0_17, %c0_18] : memref<2x2xf32, #tpu.memory_space<vmem>>, vector<2x2xf32>
    tpu.vector_store %arg9[%c0_17, %c0_18], %22 {strides = array<i32>} : memref<2x2xf32, #tpu.memory_space<vmem>>, vector<2x2xf32>,
    %c0_19 = arith.constant 0 : index
    %c0_20 = arith.constant 0 : index
    %24 = vector.load %arg2[%c0_19, %c0_20] : memref<2x784xf32, #tpu.memory_space<vmem>>, vector<2x784xf32>
    %25 = arith.truncf %24 : vector<2x784xf32> to vector<2x784xbf16>
    %c0_21 = arith.constant 0 : index
    %c0_22 = arith.constant 0 : index
    %26 = vector.load %arg3[%c0_21, %c0_22] : memref<784x128xbf16, #tpu.memory_space<vmem>>, vector<784x128xbf16>
    %cst_23 = arith.constant dense<0.000000e+00> : vector<2x128xf32>
    %27 = tpu.matmul %25, %26, %cst_23 {dimension_numbers = #tpu.dot_dimension_numbers<[1], [0], [0], [1], [0, 0, 1, 1], [], []>} : vector<2x784xbf16>, vector<784x128xbf16>, vector<2x128xf32> -> vector<2x128xf32>
    %c0_24 = arith.constant 0 : index
    %c0_25 = arith.constant 0 : index
    %28 = vector.load %arg4[%c0_24, %c0_25] : memref<1x128xf32, #tpu.memory_space<vmem>>, vector<1x128xf32>
    %29 = vector.broadcast %28 : vector<1x128xf32> to vector<2x128xf32>
    %30 = arith.addf %27, %29 : vector<2x128xf32>
    %cst_26 = arith.constant 0.000000e+00 : f32
    %31 = vector.broadcast %cst_26 : f32 to vector<2x128xf32>
    %32 = arith.maximumf %30, %31 : vector<2x128xf32>
    %33 = arith.truncf %32 : vector<2x128xf32> to vector<2x128xbf16>
    %c0_27 = arith.constant 0 : index
    %c0_28 = arith.constant 0 : index
    %34 = vector.load %arg5[%c0_27, %c0_28] : memref<128x64xbf16, #tpu.memory_space<vmem>>, vector<128x64xbf16>
    %cst_29 = arith.constant dense<0.000000e+00> : vector<2x64xf32>
    %35 = tpu.matmul %33, %34, %cst_29 {dimension_numbers = #tpu.dot_dimension_numbers<[1], [0], [0], [1], [0, 0, 1, 1], [], []>} : vector<2x128xbf16>, vector<128x64xbf16>, vector<2x64xf32> -> vector<2x64xf32>
    %c0_30 = arith.constant 0 : index
    %c0_31 = arith.constant 0 : index
    %36 = vector.load %arg6[%c0_30, %c0_31] : memref<1x64xf32, #tpu.memory_space<vmem>>, vector<1x64xf32>
    %37 = vector.broadcast %36 : vector<1x64xf32> to vector<2x64xf32>
    %38 = arith.addf %35, %37 : vector<2x64xf32>
    %cst_32 = arith.constant 0.000000e+00 : f32
    %39 = vector.broadcast %cst_32 : f32 to vector<2x64xf32>
    %40 = arith.maximumf %38, %39 : vector<2x64xf32>
    %41 = arith.truncf %40 : vector<2x64xf32> to vector<2x64xbf16>
    %c0_33 = arith.constant 0 : index
    %c0_34 = arith.constant 0 : index
    %42 = vector.load %arg7[%c0_33, %c0_34] : memref<64x2xbf16, #tpu.memory_space<vmem>>, vector<64x2xbf16>
    %cst_35 = arith.constant dense<0.000000e+00> : vector<2x2xf32>
    %43 = tpu.matmul %41, %42, %cst_35 {dimension_numbers = #tpu.dot_dimension_numbers<[1], [0], [0], [1], [0, 0, 1, 1], [], []>} : vector<2x64xbf16>, vector<64x2xbf16>, vector<2x2xf32> -> vector<2x2xf32>
    %c0_36 = arith.constant 0 : index
    %c0_37 = arith.constant 0 : index
    %44 = vector.load %arg8[%c0_36, %c0_37] : memref<1x2xf32, #tpu.memory_space<vmem>>, vector<1x2xf32>
    %45 = vector.broadcast %44 : vector<1x2xf32> to vector<2x2xf32>
    %46 = arith.addf %43, %45 : vector<2x2xf32>
    %c0_38 = arith.constant 0 : index
    %c0_39 = arith.constant 0 : index
    %47 = vector.load %arg10[%c0_38, %c0_39] : memref<2x2xf32, #tpu.memory_space<vmem>>, vector<2x2xf32>
    tpu.vector_store %arg10[%c0_38, %c0_39], %46 {strides = array<i32>} : memref<2x2xf32, #tpu.memory_space<vmem>>, vector<2x2xf32>,
    return
  }
  func.func @transform_0(%arg0: i32) -> (i32, i32) {
    %c0_i32 = arith.constant 0 : i32
    %c0_i32_0 = arith.constant 0 : i32
    return %arg0, %c0_i32 : i32, i32
  }
  func.func @transform_1(%arg0: i32) -> (i32, i32) {
    %c0_i32 = arith.constant 0 : i32
    %c0_i32_0 = arith.constant 0 : i32
    return %arg0, %c0_i32 : i32, i32
  }
  func.func @transform_2(%arg0: i32) -> (i32, i32) {
    %c0_i32 = arith.constant 0 : i32
    %c0_i32_0 = arith.constant 0 : i32
    %c0_i32_1 = arith.constant 0 : i32
    return %c0_i32, %c0_i32_0 : i32, i32
  }
  func.func @transform_3(%arg0: i32) -> (i32, i32) {
    %c0_i32 = arith.constant 0 : i32
    %c0_i32_0 = arith.constant 0 : i32
    %c0_i32_1 = arith.constant 0 : i32
    return %c0_i32, %c0_i32_0 : i32, i32
  }
  func.func @transform_4(%arg0: i32) -> (i32, i32) {
    %c0_i32 = arith.constant 0 : i32
    %c0_i32_0 = arith.constant 0 : i32
    %c0_i32_1 = arith.constant 0 : i32
    return %c0_i32, %c0_i32_0 : i32, i32
  }
  func.func @transform_5(%arg0: i32) -> (i32, i32) {
    %c0_i32 = arith.constant 0 : i32
    %c0_i32_0 = arith.constant 0 : i32
    %c0_i32_1 = arith.constant 0 : i32
    return %c0_i32, %c0_i32_0 : i32, i32
  }
  func.func @transform_6(%arg0: i32) -> (i32, i32) {
    %c0_i32 = arith.constant 0 : i32
    %c0_i32_0 = arith.constant 0 : i32
    %c0_i32_1 = arith.constant 0 : i32
    return %c0_i32, %c0_i32_0 : i32, i32
  }
  func.func @transform_7(%arg0: i32) -> (i32, i32) {
    %c0_i32 = arith.constant 0 : i32
    %c0_i32_0 = arith.constant 0 : i32
    %c0_i32_1 = arith.constant 0 : i32
    return %c0_i32, %c0_i32_0 : i32, i32
  }
  func.func @transform_8(%arg0: i32) -> (i32, i32) {
    %c0_i32 = arith.constant 0 : i32
    %c0_i32_0 = arith.constant 0 : i32
    return %arg0, %c0_i32 : i32, i32
  }
  func.func @transform_9(%arg0: i32) -> (i32, i32) {
    %c0_i32 = arith.constant 0 : i32
    %c0_i32_0 = arith.constant 0 : i32
    return %arg0, %c0_i32 : i32, i32
  }
}

</mosaic_0001>

<bundles_post_ra>
// kernel: _lambda_.1
= control target key start
LH: loop header
LB: loop body
LE: loop exit
PB: predicated region body
PF: predicated region fallthrough
CT: control target
= control target key end

     0   :  { %15 = vsyncpa [#allocation3], 0  ;;  %s2780_s0 = inlined_call_operand.vmem [shape: f32[2,784], index: 0, kind: input, shape index: {}]   ;;  %s2781_s1 = inlined_call_operand.vmem [shape: f32[2,784], index: 1, kind: input, shape index: {}]   ;;  %s2782_s2 = inlined_call_operand.vmem [shape: bf16[784,128], index: 2, kind: input, shape index: {}]   ;;  %s2783_s3 = inlined_call_operand.vmem [shape: f32[1,128], index: 3, kind: input, shape index: {}]   ;;  %s2784_s4 = inlined_call_operand.hbm [shape: bf16[128,64], index: 4, kind: input, shape index: {}]   ;;  %s2785_s5 = inlined_call_operand.vmem [shape: f32[1,64], index: 5, kind: input, shape index: {}]   ;;  %s2786_s6 = inlined_call_operand.vmem [shape: bf16[64,2], index: 6, kind: input, shape index: {}]   ;;  %s2787_s7 = inlined_call_operand.vmem [shape: f32[1,2], index: 7, kind: input, shape index: {}]   ;;  %s2788_s8 = inlined_call_operand.hbm [shape: f32[2,2], index: 8, kind: output, shape index: {0}]   ;;  %s2789_s9 = inlined_call_operand.hbm [shape: f32[2,2], index: 9, kind: output, shape index: {1}]  }
   0x1   :  { %16 = vsyncpa [#allocation4], 0 }
   0x2   :  { %17 = vsyncpa [#allocation7], 0  ;;  %s2280_s30 = smov [#allocation2]   ;;  %s2208_s13 = scalar_lea.hbm %s2784_s4, 1024 }
   0x3   :  { %s31_s10 = sshll.u32 %s2280_s30, 4  ;;  %p2209_p0 = scmp.ne.s32.totalorder %s2784_s4, %s2208_s13  ;;  %s32_s10 = int_to_ptr.vmem [resolvable:$true] %s31_s10 }
   0x4   :  { %p2212_p1 = scmp.lt.u32.totalorder %s2208_s13, %s2784_s4 }
   0x6   :  { %p2214_p2 = pnand %p2212_p1, %p2209_p0 }
   0x8   :  { %2217 = shalt.err (!%p2214_p2)
}
   0x9   :  { %s2218_s18 = scalar_lea.vmem %s32_s10, 1024  ;;  %p2223_p4 = scmp.lt.s32.totalorder %s32_s10, %s32_s10 }
   0xa   :  { %p2219_p3 = scmp.ne.s32.totalorder %s32_s10, %s2218_s18  ;;  %p2224_p5 = scmp.lt.s32.totalorder %s2218_s18, %s2218_s18 }
   0xc   :  { %p2225_p6 = por %p2224_p5, %p2223_p4 }
   0xe   :  { %p2226_p7 = pnand %p2225_p6, %p2219_p3 }
  0x10   :  { %2229 = shalt.err (!%p2226_p7)
}
  0x11   :  { %s2281_s19 = smov 64   ;;  %s2282_s20 = smov 4  }
  0x12   :  { %37 = dma.hbm_to_vmem [thread:$0]  %s2784_s4, 1024, %s32_s10, [#allocation3], %s2281_s19, %s2281_s19, %s2282_s20  }
  0x13   :  { %2274 = dma.done.wait [#allocation3], 1024  }
  0x14   :  { %2275 = vsyncadd [#allocation3], 4294966272  ;;  %v2082_v0 = vld [vmem:[%s2782_s2 + $0x40] sm:$0xff]   ;;  %v2086_v4 = vld [vmem:[%s2782_s2 + $0x48] sm:$0xff]   ;;  %v2283_v21 = vmov 1983009808   ;;  %v56_v23 = vlaneseq }
  0x15   :  { %v2083_v1 = vld [vmem:[%s2782_s2] sm:$0xff]   ;;  %1834 = vmatprep.subr.bf16.mxu0 %v2082_v0  ;;  %v2087_v5 = vld [vmem:[%s2782_s2 + $0x8] sm:$0xff]   ;;  %v2090_v8 = vld [vmem:[%s2782_s2 + $0x50] sm:$0xff]   ;;  %v54_v22 = vunpack.c.l.s4 %v2283_v21  ;;  %v2284_v45 = vmov 0.0   ;;  %vm2285_vm0 = vmmov 0   ;;  %vm498_vm1 = vcmask 130048  }
  0x16   :  { %v2084_v2 = vld [vmem:[%s2782_s2 + $0xc0] sm:$0xff]   ;;  %1835 = vmatpush3.bf16.msra.mxu0 %v2083_v1  ;;  %v2088_v6 = vld [vmem:[%s2782_s2 + $0xc8] sm:$0xff]   ;;  %v2091_v9 = vld [vmem:[%s2782_s2 + $0x10] sm:$0xff]   ;;  %v57_v29 = vshrl.u32 %v56_v23, 7  ;;  %vm816_vm2 = vcmask 523264   ;;  %vm860_vm3 = vcmask 9216  }
  0x17   :  { %v2085_v3 = vld [vmem:[%s2782_s2 + $0x80] sm:$0xff]   ;;  %1856 = vmatprep.subr.bf16.mxu1 %v2084_v2  ;;  %1836 = vmatprep.subr.bf16.mxu0 %v2086_v4  ;;  %v2089_v7 = vld [vmem:[%s2782_s2 + $0x88] sm:$0xff]   ;;  %v2092_v10 = vld [vmem:[%s2782_s2 + $0xd0] sm:$0xff]   ;;  %v55_v28 = vunpack.c.0.s8 %v54_v22  ;;  %s2286_s12 = smov [#allocation5]  }
  0x18   :  { %1857 = vmatpush3.bf16.msra.mxu1 %v2085_v3  ;;  %v2093_v11 = vld [vmem:[%s2782_s2 + $0x90] sm:$0xff]   ;;  %v2094_v12 = vld [vmem:[%s2782_s2 + $0x58] sm:$0xff]   ;;  %v2098_v16 = vld [vmem:[%s2782_s2 + $0x60] sm:$0xff]   ;;  %s1679_s13 = sshll.u32 %s2286_s12, 4  ;;  %s1680_s13 = int_to_ptr.vmem [resolvable:$true] %s1679_s13 }
  0x19   :  { %1858 = vmatprep.subr.bf16.mxu1 %v2088_v6  ;;  %v2095_v13 = vld [vmem:[%s2782_s2 + $0x18] sm:$0xff]   ;;  %v2099_v17 = vld [vmem:[%s2782_s2 + $0x20] sm:$0xff]   ;;  %v2102_v20 = vld [vmem:[%s2782_s2 + $0x68] sm:$0xff]   ;;  %v2437_v34 = vsub.s32 %v55_v28, %v57_v29  ;;  %s2230_s14 = scalar_lea.vmem %s1680_s13, 32  ;;  %p2235_p9 = scmp.lt.s32.totalorder %s1680_s13, %s1680_s13 }
  0x1a   :  { %1837 = vmatpush3.bf16.msra.mxu0 %v2087_v5  ;;  %v2096_v14 = vld [vmem:[%s2782_s2 + $0xd8] sm:$0xff]   ;;  %v2100_v18 = vld [vmem:[%s2782_s2 + $0xe0] sm:$0xff]   ;;  %v2103_v24 = vld [vmem:[%s2782_s2 + $0x28] sm:$0xff]   ;;  %p2231_p8 = scmp.ne.s32.totalorder %s1680_s13, %s2230_s14  ;;  %p2236_p10 = scmp.lt.s32.totalorder %s2230_s14, %s2230_s14 }
  0x1b   :  { %1838 = vmatprep.subr.bf16.mxu0 %v2090_v8  ;;  %v2097_v15 = vld [vmem:[%s2782_s2 + $0x98] sm:$0xff]   ;;  %v2101_v19 = vld [vmem:[%s2782_s2 + $0xa0] sm:$0xff]   ;;  %v2104_v25 = vld [vmem:[%s2782_s2 + $0xe8] sm:$0xff]  }
  0x1c   :  { %1859 = vmatpush3.bf16.msra.mxu1 %v2089_v7  ;;  %v2105_v26 = vld [vmem:[%s2782_s2 + $0xa8] sm:$0xff]   ;;  %v2106_v27 = vld [vmem:[%s2782_s2 + $0x70] sm:$0xff]   ;;  %v2110_v33 = vld [vmem:[%s2782_s2 + $0x78] sm:$0xff]   ;;  %p2237_p11 = por %p2236_p10, %p2235_p9 }
  0x1d   :  { %1860 = vmatprep.subr.bf16.mxu1 %v2092_v10  ;;  %v2107_v30 = vld [vmem:[%s2782_s2 + $0x30] sm:$0xff]   ;;  %v2111_v35 = vld [vmem:[%s2782_s2 + $0x38] sm:$0xff]   ;;  %v48_v37 = vld [vmem:[%s2780_s0] sm:$0xff] }
  0x1e   :  { %1839 = vmatpush3.bf16.msra.mxu0 %v2091_v9  ;;  %v2108_v31 = vld [vmem:[%s2782_s2 + $0xf0] sm:$0xff]   ;;  %v2112_v36 = vld [vmem:[%s2782_s2 + $0xf8] sm:$0xff]   ;;  %v59_v38 = vrot.slane %v48_v37, %v2437_v34  ;;  %v52_v40 = vcombine.high %v48_v37, %v48_v37  ;;  %v2114_v41 = vld [vmem:[%s2782_s2 + $0x140] sm:$0xff]   ;;  %p2238_p12 = pnand %p2237_p11, %p2231_p8 }
  0x1f   :  { %1840 = vmatprep.subr.bf16.mxu0 %v2094_v12  ;;  %v2109_v32 = vld [vmem:[%s2782_s2 + $0xb0] sm:$0xff]   ;;  %v2113_v39 = vld [vmem:[%s2782_s2 + $0xb8] sm:$0xff]   ;;  %v2116_v48 = vld [vmem:[%s2782_s2 + $0x100] sm:$0xff]  }
  0x20   :  { %1861 = vmatpush3.bf16.msra.mxu1 %v2093_v11  ;;  %v67_v42 = vcombine.high %v59_v38, %v59_v38  ;;  %v66_v43 = vrot.slane %v52_v40, %v2437_v34  ;;  %v92_v44 = vpack.c.bf16 %v59_v38, %v59_v38  ;;  %v2117_v50 = vld [vmem:[%s2782_s2 + $0x148] sm:$0xff]   ;;  %v2119_v53 = vld [vmem:[%s2782_s2 + $0x150] sm:$0xff]   ;;  %v2121_v55 = vld [vmem:[%s2782_s2 + $0x158] sm:$0xff]  }
  0x21   :  { %1862 = vmatprep.subr.bf16.mxu1 %v2096_v14  ;;  %v2118_v52 = vld [vmem:[%s2782_s2 + $0x108] sm:$0xff]   ;;  %v2120_v54 = vld [vmem:[%s2782_s2 + $0x110] sm:$0xff]   ;;  %v2122_v56 = vld [vmem:[%s2782_s2 + $0x118] sm:$0xff]  }
  0x22   :  { %1841 = vmatpush3.bf16.msra.mxu0 %v2095_v13  ;;  %v93_v46 = vpack.c.bf16 %v67_v42, %v67_v42  ;;  %v68_v47 = vcombine.high %v66_v43, %v66_v43  ;;  %v94_v49 = vpack.c.bf16 %v66_v43, %v66_v43  ;;  %v2123_v57 = vld [vmem:[%s2782_s2 + $0x160] sm:$0xff]   ;;  %v49_v59 = vld [vmem:[%s2780_s0 + $0x8] sm:$0x3f]  ;;  %v2127_v5 = vld [vmem:[%s2782_s2 + $0x170] sm:$0xff]  }
  0x23   :  { %1842 = vmatprep.subr.bf16.mxu0 %v2098_v16  ;;  %v2131_v58 = vld [vmem:[%s2782_s2 + $0x180] sm:$0xff]   ;;  %v69_v61 = vcombine.high %v49_v59, %v49_v59  ;;  %v76_v62 = vrot.slane %v49_v59, %v2437_v34  ;;  %v2125_v63 = vld [vmem:[%s2782_s2 + $0x168] sm:$0xff]   ;;  %v2128_v6 = vld [vmem:[%s2782_s2 + $0x130] sm:$0xff]  }
  0x24   :  { %1863 = vmatpush3.bf16.msra.mxu1 %v2097_v15  ;;  %534 = vmatprep.mubr.bf16.mxu0 %v93_v46  ;;  %v95_v51 = vpack.c.bf16 %v68_v47, %v68_v47  ;;  %v2124_v60 = vld [vmem:[%s2782_s2 + $0x120] sm:$0xff]   ;;  %v2126_v2 = vld [vmem:[%s2782_s2 + $0x128] sm:$0xff]   ;;  %v2129_v7 = vld [vmem:[%s2782_s2 + $0x178] sm:$0xff]  }
  0x25   :  { %1864 = vmatprep.subr.bf16.mxu1 %v2100_v18  ;;  %v83_v0 = vrot.slane %v69_v61, %v2437_v34  ;;  %v84_v1 = vcombine.high %v76_v62, %v76_v62  ;;  %v2130_v8 = vld [vmem:[%s2782_s2 + $0x138] sm:$0xff]   ;;  %v96_v9 = vpack.c.bf16 %v76_v62, %v76_v62  ;;  %v2133_v10 = vld [vmem:[#allocation2] sm:$0xff]   ;;  %v2134_v11 = vld [vmem:[#allocation2 + $0x8] sm:$0xff]  }
  0x26   :  { %1843 = vmatpush3.bf16.msra.mxu0 %v2099_v17  ;;  %574 = vmatprep.mubr.bf16.mxu1 %v95_v51  ;;  %v2135_v12 = vld [vmem:[#allocation2 + $0x10] sm:$0xff]   ;;  %v2136_v13 = vld [vmem:[#allocation2 + $0x18] sm:$0xff]   ;;  %v2137_v14 = vld [vmem:[#allocation2 + $0x20] sm:$0xff]  }
  0x27   :  { %1844 = vmatprep.subr.bf16.mxu0 %v2102_v20  ;;  %v97_v3 = vpack.c.bf16 %v84_v1, %v84_v1  ;;  %v98_v4 = vpack.c.bf16 %v83_v0, %v83_v0  ;;  %v2138_v15 = vld [vmem:[#allocation2 + $0x28] sm:$0xff]   ;;  %v2139_v16 = vld [vmem:[#allocation2 + $0x30] sm:$0xff]   ;;  %v2140_v17 = vld [vmem:[#allocation2 + $0x38] sm:$0xff]  }
  0x28   :  { %1865 = vmatpush3.bf16.msra.mxu1 %v2101_v19  ;;  %v2141_v18 = vld [vmem:[%s2782_s2 + $0x40] sm:$0xff]   ;;  %v2152_v20 = vld [vmem:[%s2786_s6 + $0x8] sm:$0xff]   ;;  %v2155_v21 = vld [vmem:[%s2786_s6 + $0x10] sm:$0xff]  }
  0x29   :  { %1866 = vmatprep.subr.bf16.mxu1 %v2104_v25  ;;  %v2149_v19 = vld [vmem:[%s2786_s6] sm:$0xff]   ;;  %v2143_v51 = vld [vmem:[%s2782_s2 + $0x48] sm:$0xff]   ;;  %v2156_v61 = vld [vmem:[%s2782_s2 + $0x70] sm:$0xff]  }
  0x2a   :  { %1845 = vmatpush3.bf16.msra.mxu0 %v2103_v24  ;;  %v2544_v23 = vld [vmem:[%s2783_s3] ss:$0 sm:$0xff]  ;;  %v2153_v59 = vld [vmem:[%s2782_s2 + $0x68] sm:$0xff]   ;;  %v2157_v62 = vld [vmem:[%s2782_s2 + $0x30] sm:$0xff]  }
  0x2b   :  { %1846 = vmatprep.subr.bf16.mxu0 %v2106_v27  ;;  %v2159_v0 = vld [vmem:[%s2782_s2 + $0x78] sm:$0xff]  }
  0x2c   :  { %1867 = vmatpush3.bf16.msra.mxu1 %v2105_v26 }
  0x2d   :  { %1868 = vmatprep.subr.bf16.mxu1 %v2108_v31 }
  0x2e   :  { %1847 = vmatpush3.bf16.msra.mxu0 %v2107_v30 }
  0x2f   :  { %1848 = vmatprep.subr.bf16.mxu0 %v2110_v33 }
  0x30   :  { %1869 = vmatpush3.bf16.msra.mxu1 %v2109_v32 }
  0x31   :  { %1870 = vmatprep.subr.bf16.mxu1 %v2112_v36 }
  0x32   :  { %1849 = vmatpush3.bf16.msra.mxu0 %v2111_v35 }
  0x33   :  { %1878 = vmatprep.subr.bf16.mxu0 %v2114_v41 }
  0x34   :  { %1871 = vmatpush3.bf16.msra.mxu1 %v2113_v39 }
  0x35   :  { %1998 = vmatprep.subr.bf16.mxu1 %v2284_v45  ;;  %535 = vmatmul.mubr.bf16.vlgmr.msra.gmra.mrb[0].mxu0 %v92_v44 }
  0x36   :  { %1879 = vmatpush3.bf16.msra.mxu0 %v2116_v48  ;;  %614 = vmatprep.mubr.bf16.mxu0 %v97_v3  ;;  %v2160_v3 = vld [vmem:[%s2782_s2 + $0x38] sm:$0xff]  }
  0x37   :  { %575 = vmatmul.mubr.bf16.vlgmr.msra.gmra.mrb[0].mxu1 %v94_v49  ;;  %1880 = vmatprep.subr.bf16.mxu0 %v2117_v50  ;;  %v2142_v49 = vld [vmem:[%s2782_s2] sm:$0xff]  }
  0x38   :  { %2000 = vmatprep.mubr.msk.bf16.mxu1 %vm2285_vm0, %v2284_v45  ;;  %1999 = vmatpush3.bf16.msra.mxu1 %v2131_v58  ;;  %v2151_v58 = vld [vmem:[%s2782_s2 + $0x20] sm:$0xff]  }
  0x39   :  { %2004 = vmatprep.subr.bf16.mxu1 %v2284_v45 }
  0x3a   :  { %1881 = vmatpush3.bf16.msra.mxu0 %v2118_v52  ;;  %v2144_v52 = vld [vmem:[%s2782_s2 + $0x8] sm:$0xff]  }
  0x3b   :  { %1882 = vmatprep.subr.bf16.mxu0 %v2119_v53  ;;  %v2145_v53 = vld [vmem:[%s2782_s2 + $0x50] sm:$0xff]  }
  0x3e   :  { %1883 = vmatpush3.bf16.msra.mxu0 %v2120_v54  ;;  %v2146_v54 = vld [vmem:[%s2782_s2 + $0x10] sm:$0xff]  }
  0x3f   :  { %1884 = vmatprep.subr.bf16.mxu0 %v2121_v55  ;;  %2001 = vmatmul.mubr.msk.bf16.vlgmr.msra.gmra.mrb[4].mxu1 %vm498_vm1, %v98_v4  ;;  %v2147_v55 = vld [vmem:[%s2782_s2 + $0x58] sm:$0xff]  }
  0x40   :  { %2020 = vmatprep.mubr.msk.bf16.mxu1 %vm2285_vm0, %v2284_v45  ;;  %2005 = vmatpush3.bf16.msra.mxu1 %v2133_v10  ;;  %v2167_v10 = vld [vmem:[%s2782_s2 + $0x148] sm:$0xff]  }
  0x41   :  { %2006 = vmatprep.subr.bf16.mxu1 %v2284_v45 }
  0x42   :  { %1885 = vmatpush3.bf16.msra.mxu0 %v2122_v56  ;;  %v2148_v56 = vld [vmem:[%s2782_s2 + $0x18] sm:$0xff]  }
  0x43   :  { %1886 = vmatprep.subr.bf16.mxu0 %v2123_v57  ;;  %v2150_v57 = vld [vmem:[%s2782_s2 + $0x60] sm:$0xff]  }
  0x44   :  { %2007 = vmatpush3.bf16.msra.mxu1 %v2134_v11  ;;  %v2168_v11 = vld [vmem:[%s2782_s2 + $0x108] sm:$0xff]  }
  0x45   :  { %2008 = vmatprep.subr.bf16.mxu1 %v2284_v45 }
  0x46   :  { %1887 = vmatpush3.bf16.msra.mxu0 %v2124_v60  ;;  %v2154_v60 = vld [vmem:[%s2782_s2 + $0x28] sm:$0xff]  }
  0x47   :  { %1888 = vmatprep.subr.bf16.mxu0 %v2125_v63  ;;  %v862_v63 = vld [vmem:[%s2781_s1] sm:$0xff] }
  0x48   :  { %2009 = vmatpush3.bf16.msra.mxu1 %v2135_v12  ;;  %v873_v1 = vrot.slane %v862_v63, %v2437_v34  ;;  %v2171_v12 = vld [vmem:[%s2782_s2 + $0x150] sm:$0xff]  }
  0x49   :  { %2010 = vmatprep.subr.bf16.mxu1 %v2284_v45 }
  0x4a   :  { %1889 = vmatpush3.bf16.msra.mxu0 %v2126_v2  ;;  %v2158_v2 = vld [vmem:[%s2786_s6 + $0x18] sm:$0xff]   ;;  %v881_v4 = vcombine.high %v873_v1, %v873_v1 }
  0x4b   :  { %1890 = vmatprep.subr.bf16.mxu0 %v2127_v5  ;;  %v2161_v5 = vld [vmem:[%s2782_s2 + $0xc0] sm:$0xff]  }
  0x4c   :  { %2011 = vmatpush3.bf16.msra.mxu1 %v2136_v13  ;;  %v2172_v13 = vld [vmem:[%s2782_s2 + $0x110] sm:$0xff]  }
  0x4d   :  { %2012 = vmatprep.subr.bf16.mxu1 %v2284_v45 }
  0x4e   :  { %1891 = vmatpush3.bf16.msra.mxu0 %v2128_v6  ;;  %v907_v6 = vpack.c.bf16 %v881_v4, %v881_v4  ;;  %v2196_v4 = vld [vmem:[#allocation2] sm:$0xff]  }
  0x4f   :  { %1892 = vmatprep.subr.bf16.mxu0 %v2129_v7  ;;  %v2163_v7 = vld [vmem:[%s2782_s2 + $0x140] sm:$0xff]  }
  0x50   :  { %2013 = vmatpush3.bf16.msra.mxu1 %v2137_v14  ;;  %v2175_v14 = vld [vmem:[%s2782_s2 + $0x158] sm:$0xff]  }
  0x51   :  { %2014 = vmatprep.subr.bf16.mxu1 %v2284_v45 }
  0x52   :  { %1893 = vmatpush3.bf16.msra.mxu0 %v2130_v8  ;;  %v906_v8 = vpack.c.bf16 %v873_v1, %v873_v1 }
  0x53   :  { %2024 = vmatprep.subr.bf16.mxu0 %v2284_v45 }
  0x54   :  { %2015 = vmatpush3.bf16.msra.mxu1 %v2138_v15  ;;  %v2176_v15 = vld [vmem:[%s2782_s2 + $0x118] sm:$0xff]  }
  0x55   :  { %615 = vmatmul.mubr.bf16.vlgmr.msra.gmra.mrb[4].mxu0 %v96_v9  ;;  %2016 = vmatprep.subr.bf16.mxu1 %v2284_v45  ;;  %v2164_v9 = vld [vmem:[%s2782_s2 + $0x100] sm:$0xff]  }
  0x56   :  { %2032 = vmatprep.mubr.msk.bf16.mxu0 %vm2285_vm0, %v2284_v45  ;;  %2025 = vmatpush3.bf16.msra.mxu0 %v2149_v19  ;;  %v2184_v19 = vld [vmem:[%s2782_s2 + $0x128] sm:$0xff]  }
  0x57   :  { %2026 = vmatprep.subr.bf16.mxu0 %v2284_v45 }
  0x58   :  { %2017 = vmatpush3.bf16.msra.mxu1 %v2139_v16  ;;  %v2179_v16 = vld [vmem:[%s2782_s2 + $0x160] sm:$0xff]  }
  0x59   :  { %2018 = vmatprep.subr.bf16.mxu1 %v2284_v45 }
  0x5a   :  { %2027 = vmatpush3.bf16.msra.mxu0 %v2152_v20  ;;  %v2187_v20 = vld [vmem:[%s2782_s2 + $0x170] sm:$0xff]  }
  0x5b   :  { %2028 = vmatprep.subr.bf16.mxu0 %v2284_v45 }
  0x5c   :  { %2019 = vmatpush3.bf16.msra.mxu1 %v2140_v17  ;;  %v2180_v17 = vld [vmem:[%s2782_s2 + $0x120] sm:$0xff]  }
  0x5d   :  { %1916 = vmatprep.subr.bf16.mxu1 %v2141_v18  ;;  %v2183_v18 = vld [vmem:[%s2782_s2 + $0x168] sm:$0xff]  }
  0x5e   :  { %2029 = vmatpush3.bf16.msra.mxu0 %v2155_v21  ;;  %v2188_v21 = vld [vmem:[%s2782_s2 + $0x130] sm:$0xff]  }
  0x5f   :  { %2030 = vmatprep.subr.bf16.mxu0 %v2284_v45 }
  0x62   :  { %2031 = vmatpush3.bf16.msra.mxu0 %v2158_v2 }
  0x63   :  { %1938 = vmatprep.subr.bf16.mxu0 %v2161_v5 }
 0x108   :  { %v1850_v22 = vpop.f32.mrb[0].mxu0 }
 0x109   :  { %v1851_v24 = vpop.f32.mrb[1].mxu0 }
 0x10a   :  { %v1852_v25 = vadd.f32 %v1851_v24, %v1850_v22  ;;  %v1853_v26 = vpop.f32.mrb[2].mxu0  ;;  %v1872_v27 = vpop.f32.mrb[0].mxu1  ;;  %v2647_v22 = vld [vmem:[%s2781_s1 + $0x8] sm:$0x3f] }
 0x10b   :  { %v1854_v28 = vpop.f32.mrb[3].mxu0  ;;  %v1873_v29 = vpop.f32.mrb[1].mxu1  ;;  %v890_v24 = vrot.slane %v2647_v22, %v2437_v34  ;;  %v2192_v26 = vld [vmem:[%s2782_s2 + $0x138] sm:$0xff]  }
 0x10c   :  { %v537_v30 = vadd.f32 %v1852_v25, %v2544_v23  ;;  %v1874_v31 = vadd.f32 %v1873_v29, %v1872_v27  ;;  %v1875_v32 = vpop.f32.mrb[2].mxu1  ;;  %v2191_v25 = vld [vmem:[%s2782_s2 + $0x178] sm:$0xff]  }
 0x10d   :  { %v1876_v33 = vpop.f32.mrb[3].mxu1  ;;  %v898_v27 = vcombine.high %v890_v24, %v890_v24  ;;  %v910_v29 = vpack.c.bf16 %v890_v24, %v890_v24  ;;  %v2664_v32 = vld [vmem:[%s2785_s5] ss:$0 sm:$0xff] }
 0x10e   :  { %v577_v35 = vadd.f32 %v1874_v31, %v537_v30  ;;  %v866_v30 = vcombine.high %v862_v63, %v862_v63 }
 0x10f   :  { %v911_v28 = vpack.c.bf16 %v898_v27, %v898_v27 }
 0x110   :  { %v880_v31 = vrot.slane %v866_v30, %v2437_v34 }
 0x112   :  { %v656_v36 = vpop.f32.mrb[4].mxu1 }
 0x113   :  { %v2002_v37 = vpop.f32.mrb[5].mxu1 }
 0x114   :  { %v659_v38 = vpop.f32.mrb[6].mxu1 }
 0x115   :  { %v2003_v39 = vpop.f32.mrb[7].mxu1 }
 0x128   :  { %v1894_v40 = vpop.f32.mrb[4].mxu0 }
 0x129   :  { %v1895_v41 = vpop.f32.mrb[5].mxu0 }
 0x12a   :  { %v1896_v42 = vadd.f32 %v1895_v41, %v1894_v40  ;;  %v1897_v43 = vpop.f32.mrb[6].mxu0  ;;  %v2162_v41 = vld [vmem:[%s2782_s2 + $0x80] sm:$0xff]  }
 0x12b   :  { %v1898_v44 = vpop.f32.mrb[7].mxu0 }
 0x12c   :  { %v617_v46 = vadd.f32 %v1896_v42, %v577_v35  ;;  %v882_v35 = vcombine.high %v880_v31, %v880_v31  ;;  %v2165_v44 = vld [vmem:[%s2782_s2 + $0xc8] sm:$0xff]  }
 0x12e   :  { %v657_v47 = vadd.f32 %v656_v36, %v617_v46  ;;  %v909_v42 = vpack.c.bf16 %v882_v35, %v882_v35  ;;  %v2166_v46 = vld [vmem:[%s2782_s2 + $0x88] sm:$0xff]  }
 0x130   :  { %v662_v48 = vmax.f32 %v657_v47, 0.0  ;;  %v2169_v47 = vld [vmem:[%s2782_s2 + $0xd0] sm:$0xff]  }
 0x132   :  { %v663_v50 = vpack.c.bf16 %v662_v48, %v662_v48  ;;  %v2170_v48 = vld [vmem:[%s2782_s2 + $0x90] sm:$0xff]  }
 0x134   :  { %2021 = vmatmul.mubr.bf16.vlgmr.msra.gmra.mrb[8].mxu1 %v663_v50  ;;  %v2174_v50 = vld [vmem:[%s2782_s2 + $0x98] sm:$0xff]  }
 0x135   :  { %1917 = vmatpush3.bf16.msra.mxu1 %v2142_v49  ;;  %1347 = vmatprep.mubr.bf16.mxu1 %v907_v6  ;;  %v2173_v49 = vld [vmem:[%s2782_s2 + $0xd8] sm:$0xff]   ;;  %v2198_v6 = vld [vmem:[#allocation2 + $0x10] sm:$0xff]  }
 0x136   :  { %1918 = vmatprep.subr.bf16.mxu1 %v2143_v51  ;;  %v2177_v51 = vld [vmem:[%s2782_s2 + $0xe0] sm:$0xff]  }
 0x139   :  { %1919 = vmatpush3.bf16.msra.mxu1 %v2144_v52  ;;  %v2178_v52 = vld [vmem:[%s2782_s2 + $0xa0] sm:$0xff]  }
 0x13a   :  { %1920 = vmatprep.subr.bf16.mxu1 %v2145_v53  ;;  %v2181_v53 = vld [vmem:[%s2782_s2 + $0xe8] sm:$0xff]  }
 0x13d   :  { %1921 = vmatpush3.bf16.msra.mxu1 %v2146_v54  ;;  %v2182_v54 = vld [vmem:[%s2782_s2 + $0xa8] sm:$0xff]  }
 0x13e   :  { %1922 = vmatprep.subr.bf16.mxu1 %v2147_v55  ;;  %v2185_v55 = vld [vmem:[%s2782_s2 + $0xf0] sm:$0xff]  }
 0x141   :  { %1923 = vmatpush3.bf16.msra.mxu1 %v2148_v56  ;;  %v2186_v56 = vld [vmem:[%s2782_s2 + $0xb0] sm:$0xff]  }
 0x142   :  { %1924 = vmatprep.subr.bf16.mxu1 %v2150_v57  ;;  %v2189_v57 = vld [vmem:[%s2782_s2 + $0xf8] sm:$0xff]  }
 0x145   :  { %1925 = vmatpush3.bf16.msra.mxu1 %v2151_v58  ;;  %v2190_v58 = vld [vmem:[%s2782_s2 + $0xb8] sm:$0xff]  }
 0x146   :  { %1926 = vmatprep.subr.bf16.mxu1 %v2153_v59  ;;  %v908_v59 = vpack.c.bf16 %v880_v31, %v880_v31 }
 0x149   :  { %1927 = vmatpush3.bf16.msra.mxu1 %v2154_v60  ;;  %v883_v60 = vcombine.high %v2647_v22, %v2647_v22 }
 0x14a   :  { %1928 = vmatprep.subr.bf16.mxu1 %v2156_v61  ;;  %v2195_v61 = vld [vmem:[%s2782_s2 + $0x180] sm:$0xff]  }
 0x14d   :  { %1929 = vmatpush3.bf16.msra.mxu1 %v2157_v62  ;;  %v897_v62 = vrot.slane %v883_v60, %v2437_v34  ;;  %v2197_v34 = vld [vmem:[#allocation2 + $0x8] sm:$0xff]  }
 0x14e   :  { %1930 = vmatprep.subr.bf16.mxu1 %v2159_v0 }
 0x14f   :  { %v912_v63 = vpack.c.bf16 %v897_v62, %v897_v62 }
 0x151   :  { %1931 = vmatpush3.bf16.msra.mxu1 %v2160_v3 }
 0x152   :  { %1960 = vmatprep.subr.bf16.mxu1 %v2163_v7  ;;  %v2199_v7 = vld [vmem:[#allocation2 + $0x18] sm:$0xff]  }
 0x154   :  { %1348 = vmatmul.mubr.bf16.vlgmr.msra.gmra.mrb[12].mxu1 %v906_v8  ;;  %v2200_v8 = vld [vmem:[#allocation2 + $0x20] sm:$0xff]  }
 0x155   :  { %1961 = vmatpush3.bf16.msra.mxu1 %v2164_v9  ;;  %1427 = vmatprep.mubr.bf16.mxu1 %v911_v28 }
 0x156   :  { %1962 = vmatprep.subr.bf16.mxu1 %v2167_v10 }
 0x159   :  { %1963 = vmatpush3.bf16.msra.mxu1 %v2168_v11  ;;  %v2201_v11 = vld [vmem:[#allocation2 + $0x28] sm:$0xff]  }
 0x15a   :  { %1964 = vmatprep.subr.bf16.mxu1 %v2171_v12 }
 0x15d   :  { %1965 = vmatpush3.bf16.msra.mxu1 %v2172_v13 }
 0x15e   :  { %1966 = vmatprep.subr.bf16.mxu1 %v2175_v14 }
 0x161   :  { %1967 = vmatpush3.bf16.msra.mxu1 %v2176_v15  ;;  %v2202_v15 = vld [vmem:[#allocation2 + $0x30] sm:$0xff]  }
 0x162   :  { %1968 = vmatprep.subr.bf16.mxu1 %v2179_v16  ;;  %v2203_v16 = vld [vmem:[#allocation2 + $0x38] sm:$0xff]  }
 0x165   :  { %1969 = vmatpush3.bf16.msra.mxu1 %v2180_v17  ;;  %v2204_v17 = vld [vmem:[%s2786_s6] sm:$0xff]  }
 0x166   :  { %1970 = vmatprep.subr.bf16.mxu1 %v2183_v18  ;;  %v2205_v18 = vld [vmem:[%s2786_s6 + $0x8] sm:$0xff]  }
 0x169   :  { %1971 = vmatpush3.bf16.msra.mxu1 %v2184_v19  ;;  %v1762_v19 = vld [vmem:[%s2787_s7] ss:$0 sm:$0xff] }
 0x16a   :  { %1972 = vmatprep.subr.bf16.mxu1 %v2187_v20 }
 0x16d   :  { %1973 = vmatpush3.bf16.msra.mxu1 %v2188_v21 }
 0x16e   :  { %1974 = vmatprep.subr.bf16.mxu1 %v2191_v25 }
 0x171   :  { %1975 = vmatpush3.bf16.msra.mxu1 %v2192_v26 }
 0x172   :  { %2062 = vmatprep.subr.bf16.mxu1 %v2284_v45 }
 0x174   :  { %1428 = vmatmul.mubr.bf16.vlgmr.msra.gmra.mrb[16].mxu1 %v910_v29 }
 0x175   :  { %2070 = vmatprep.mubr.msk.bf16.mxu1 %vm2285_vm0, %v2284_v45  ;;  %2063 = vmatpush3.bf16.msra.mxu1 %v2204_v17 }
 0x176   :  { %2064 = vmatprep.subr.bf16.mxu1 %v2284_v45 }
 0x179   :  { %2065 = vmatpush3.bf16.msra.mxu1 %v2205_v18 }
 0x17a   :  { %2066 = vmatprep.subr.bf16.mxu1 %v2284_v45 }
 0x207   :  { %v769_v33 = vpop.f32.mrb[8].mxu1 }
 0x208   :  { %v770_v36 = vadd.f32 %v2664_v32, %v769_v33  ;;  %v2022_v37 = vpop.f32.mrb[9].mxu1 }
 0x209   :  { %v772_v38 = vpop.f32.mrb[10].mxu1 }
 0x20a   :  { %v775_v39 = vmax.f32 %v770_v36, 0.0  ;;  %v2023_v40 = vpop.f32.mrb[11].mxu1 }
 0x20c   :  { %v776_v43 = vpack.c.bf16 %v775_v39, %v775_v39 }
 0x20e   :  { %2033 = vmatmul.mubr.msk.bf16.vlgmr.msra.gmra.mrb[8].mxu0 %vm816_vm2, %v776_v43  ;;  %v2206_v43 = vld [vmem:[%s2786_s6 + $0x10] sm:$0xff]  }
 0x20f   :  { %1939 = vmatpush3.bf16.msra.mxu0 %v2162_v41  ;;  %1387 = vmatprep.mubr.bf16.mxu0 %v909_v42 }
 0x210   :  { %1940 = vmatprep.subr.bf16.mxu0 %v2165_v44  ;;  %2067 = vmatpush3.bf16.msra.mxu1 %v2206_v43 }
 0x211   :  { %2068 = vmatprep.subr.bf16.mxu1 %v2284_v45 }
 0x213   :  { %1941 = vmatpush3.bf16.msra.mxu0 %v2166_v46 }
 0x214   :  { %1942 = vmatprep.subr.bf16.mxu0 %v2169_v47 }
 0x217   :  { %1943 = vmatpush3.bf16.msra.mxu0 %v2170_v48 }
 0x218   :  { %1944 = vmatprep.subr.bf16.mxu0 %v2173_v49 }
 0x21b   :  { %1945 = vmatpush3.bf16.msra.mxu0 %v2174_v50 }
 0x21c   :  { %1946 = vmatprep.subr.bf16.mxu0 %v2177_v51 }
 0x21f   :  { %1947 = vmatpush3.bf16.msra.mxu0 %v2178_v52 }
 0x220   :  { %1948 = vmatprep.subr.bf16.mxu0 %v2181_v53 }
 0x223   :  { %1949 = vmatpush3.bf16.msra.mxu0 %v2182_v54 }
 0x224   :  { %1950 = vmatprep.subr.bf16.mxu0 %v2185_v55 }
 0x227   :  { %1951 = vmatpush3.bf16.msra.mxu0 %v2186_v56  ;;  %v1932_v0 = vpop.f32.mrb[12].mxu1 }
 0x228   :  { %1952 = vmatprep.subr.bf16.mxu0 %v2189_v57  ;;  %v1933_v1 = vpop.f32.mrb[13].mxu1 }
 0x229   :  { %v1934_v2 = vadd.f32 %v1933_v1, %v1932_v0  ;;  %v1935_v3 = vpop.f32.mrb[14].mxu1 }
 0x22a   :  { %v1936_v5 = vpop.f32.mrb[15].mxu1 }
 0x22b   :  { %1953 = vmatpush3.bf16.msra.mxu0 %v2190_v58  ;;  %v1350_v28 = vadd.f32 %v1934_v2, %v2544_v23  ;;  %v2207_v23 = vld [vmem:[%s2786_s6 + $0x18] sm:$0xff]  }
 0x22c   :  { %2036 = vmatprep.subr.bf16.mxu0 %v2284_v45  ;;  %2069 = vmatpush3.bf16.msra.mxu1 %v2207_v23 }
 0x22e   :  { %1388 = vmatmul.mubr.bf16.vlgmr.msra.gmra.mrb[12].mxu0 %v908_v59 }
 0x22f   :  { %2037 = vmatpush3.bf16.msra.mxu0 %v2195_v61  ;;  %2038 = vmatprep.mubr.msk.bf16.mxu0 %vm2285_vm0, %v2284_v45 }
 0x230   :  { %2042 = vmatprep.subr.bf16.mxu0 %v2284_v45 }
 0x236   :  { %2039 = vmatmul.mubr.msk.bf16.vlgmr.msra.gmra.mrb[16].mxu0 %vm498_vm1, %v912_v63 }
 0x237   :  { %2058 = vmatprep.mubr.msk.bf16.mxu0 %vm2285_vm0, %v2284_v45  ;;  %2043 = vmatpush3.bf16.msra.mxu0 %v2196_v4 }
 0x238   :  { %2044 = vmatprep.subr.bf16.mxu0 %v2284_v45 }
 0x23b   :  { %2045 = vmatpush3.bf16.msra.mxu0 %v2197_v34 }
 0x23c   :  { %2046 = vmatprep.subr.bf16.mxu0 %v2284_v45 }
 0x23f   :  { %2047 = vmatpush3.bf16.msra.mxu0 %v2198_v6 }
 0x240   :  { %2048 = vmatprep.subr.bf16.mxu0 %v2284_v45 }
 0x243   :  { %2049 = vmatpush3.bf16.msra.mxu0 %v2199_v7 }
 0x244   :  { %2050 = vmatprep.subr.bf16.mxu0 %v2284_v45 }
 0x247   :  { %2051 = vmatpush3.bf16.msra.mxu0 %v2200_v8  ;;  %v1976_v9 = vpop.f32.mrb[16].mxu1 }
 0x248   :  { %2052 = vmatprep.subr.bf16.mxu0 %v2284_v45  ;;  %v1977_v10 = vpop.f32.mrb[17].mxu1 }
 0x249   :  { %v1979_v12 = vpop.f32.mrb[18].mxu1  ;;  %v1978_v13 = vadd.f32 %v1977_v10, %v1976_v9 }
 0x24a   :  { %v1980_v14 = vpop.f32.mrb[19].mxu1 }
 0x24b   :  { %2053 = vmatpush3.bf16.msra.mxu0 %v2201_v11 }
 0x24c   :  { %2054 = vmatprep.subr.bf16.mxu0 %v2284_v45 }
 0x24f   :  { %2055 = vmatpush3.bf16.msra.mxu0 %v2202_v15 }
 0x250   :  { %2056 = vmatprep.subr.bf16.mxu0 %v2284_v45 }
 0x253   :  { %2057 = vmatpush3.bf16.msra.mxu0 %v2203_v16 }
 0x2e1   :  { %v854_v20 = vpop.f32.mrb[8].mxu0 }
 0x2e2   :  { %v855_v21 = vadd.f32 %v1762_v19, %v854_v20  ;;  %v2034_v22 = vpop.f32.mrb[9].mxu0 }
 0x2e3   :  { %v857_v24 = vpop.f32.mrb[10].mxu0 }
 0x2e4   :  { %v2035_v25 = vpop.f32.mrb[11].mxu0  ;;  %861 = vst.msk [vmem:[#allocation5] sm:$0x3] %vm860_vm3, %v855_v21 }
 0x301   :  { %v1954_v26 = vpop.f32.mrb[12].mxu0 }
 0x302   :  { %v1955_v27 = vpop.f32.mrb[13].mxu0 }
 0x303   :  { %v1956_v29 = vadd.f32 %v1955_v27, %v1954_v26  ;;  %v1957_v30 = vpop.f32.mrb[14].mxu0 }
 0x304   :  { %v1958_v31 = vpop.f32.mrb[15].mxu0 }
 0x305   :  { %v1390_v33 = vadd.f32 %v1956_v29, %v1350_v28 }
 0x307   :  { %v1430_v35 = vadd.f32 %v1978_v13, %v1390_v33 }
 0x309   :  { %v1469_v36 = vpop.f32.mrb[16].mxu0 }
 0x30a   :  { %v1470_v37 = vadd.f32 %v1469_v36, %v1430_v35  ;;  %v2040_v38 = vpop.f32.mrb[17].mxu0 }
 0x30b   :  { %v1472_v39 = vpop.f32.mrb[18].mxu0 }
 0x30c   :  { %v1475_v40 = vmax.f32 %v1470_v37, 0.0  ;;  %v2041_v41 = vpop.f32.mrb[19].mxu0 }
 0x30e   :  { %v1476_v42 = vpack.c.bf16 %v1475_v40, %v1475_v40 }
 0x310   :  { %2059 = vmatmul.mubr.bf16.vlgmr.msra.gmra.mrb[20].mxu0 %v1476_v42 }
 0x3e3   :  { %v1582_v44 = vpop.f32.mrb[20].mxu0 }
 0x3e4   :  { %v1583_v46 = vadd.f32 %v2664_v32, %v1582_v44  ;;  %v2060_v47 = vpop.f32.mrb[21].mxu0 }
 0x3e5   :  { %v1585_v48 = vpop.f32.mrb[22].mxu0 }
 0x3e6   :  { %v1588_v49 = vmax.f32 %v1583_v46, 0.0  ;;  %v2061_v50 = vpop.f32.mrb[23].mxu0 }
 0x3e8   :  { %v1589_v51 = vpack.c.bf16 %v1588_v49, %v1588_v49 }
 0x3ea   :  { %2071 = vmatmul.mubr.msk.bf16.vlgmr.msra.gmra.mrb[20].mxu1 %vm816_vm2, %v1589_v51 }
 0x3eb   :  { %2241 = shalt.err (!%p2238_p12)
}
 0x3ec   :  { %s2242_s16 = scalar_lea.hbm %s2788_s8, 32 }
 0x3ed   :  { %p2243_p13 = scmp.ne.s32.totalorder %s2788_s8, %s2242_s16  ;;  %p2246_p0 = scmp.lt.u32.totalorder %s2242_s16, %s2788_s8 }
 0x3ef   :  { %p2248_p1 = pnand %p2246_p0, %p2243_p13 }
 0x3f1   :  { %2251 = shalt.err (!%p2248_p1)
}
 0x3f2   :  { %1682 = dma.vmem_to_hbm [thread:$0]  %s1680_s13, 32, %s2788_s8, [#allocation4]  }
 0x3f3   :  { %s2287_s22 = smov [#allocation6]  }
 0x3f4   :  { %s1689_s23 = sshll.u32 %s2287_s22, 4  ;;  %s1690_s23 = int_to_ptr.vmem [resolvable:$true] %s1689_s23 }
 0x3f5   :  { %s2252_s3 = scalar_lea.vmem %s1690_s23, 32  ;;  %p2257_p3 = scmp.lt.s32.totalorder %s1690_s23, %s1690_s23 }
 0x3f6   :  { %p2253_p2 = scmp.ne.s32.totalorder %s1690_s23, %s2252_s3  ;;  %p2258_p4 = scmp.lt.s32.totalorder %s2252_s3, %s2252_s3 }
 0x3f8   :  { %p2259_p5 = por %p2258_p4, %p2257_p3 }
 0x3fa   :  { %p2260_p6 = pnand %p2259_p5, %p2253_p2 }
 0x4bd   :  { %v1666_v45 = vpop.f32.mrb[20].mxu1 }
 0x4be   :  { %v1667_v32 = vadd.f32 %v1762_v19, %v1666_v45  ;;  %v2072_v52 = vpop.f32.mrb[21].mxu1 }
 0x4bf   :  { %v1669_v53 = vpop.f32.mrb[22].mxu1 }
 0x4c0   :  { %v2073_v54 = vpop.f32.mrb[23].mxu1  ;;  %1672 = vst.msk [vmem:[#allocation6] sm:$0x3] %vm860_vm3, %v1667_v32 }
 0x4c1   :  { %2263 = shalt.err (!%p2260_p6)
}
 0x4c2   :  { %s2264_s8 = scalar_lea.hbm %s2789_s9, 32 }
 0x4c3   :  { %p2265_p7 = scmp.ne.s32.totalorder %s2789_s9, %s2264_s8  ;;  %p2268_p8 = scmp.lt.u32.totalorder %s2264_s8, %s2789_s9 }
 0x4c5   :  { %p2270_p9 = pnand %p2268_p8, %p2265_p7 }
 0x4c7   :  { %2273 = shalt.err (!%p2270_p9)
}
 0x4c8   :  { %1692 = dma.vmem_to_hbm [thread:$0]  %s1690_s23, 32, %s2789_s9, [#allocation7]  }
 0x4c9   :  { %2276 = dma.done.wait [#allocation4], 32  }
 0x4ca   :  { %2277 = vsyncadd [#allocation4], 4294967264 }
 0x4cb   :  { %2278 = dma.done.wait [#allocation7], 32  }
 0x4cc   :  { %2279 = vsyncadd [#allocation7], 4294967264 }
 0x4cd   :  { %1699 = vsyncpa [#allocation3], 1 }
 0x4ce   :  { %1700 = vsyncpa [#allocation4], 1 }
 0x4cf   :  { %1701 = vsyncpa [#allocation7], 1 }

</bundles_post_ra>
